<compile_context>
chip_gen: v7x
topology: tpu7x:2x2x1
jax: 0.10.0
libtpu: 0.0.40
codegen_flags: <defaults>
</compile_context>

<pallas_src>
import functools

import jax
import jax.numpy as jnp
from jax import lax
from jax.experimental import pallas as pl
from jax.experimental.pallas import tpu as pltpu

LANE = 128
SUBLANE = 8
MAX_BLOCK_ROWS = 4096   # (4096, 128) f32 = 2 MiB per input per pipeline buffer
CHUNK_ROWS = 512        # in-kernel compute chunk -> elementwise temps ~256 KiB each


def _focal_loss_kernel(preds_ref, labels_ref, out_ref, *,
                       alpha, beta, gamma, theta,
                       block_rows, chunk_rows, valid_rows, ragged):
    """Per-block partial sum of the focal loss, written as an (8,128) slab."""
    n_chunks = block_rows // chunk_rows
    block_base = pl.program_id(0) * block_rows

    # Coefficients folded at trace time:
    #   fn2 + fn1 + f0 == (l-1)*(c2*l^2 + c1*l + c0) * p**theta * log(1.000001-p)
    #   fp1            == -alpha * l*(l+1)*(l+2)     * (1-p)**theta * log(p+1e-6)
    c2 = gamma + 0.9 * beta
    c1 = gamma + 2.8 * beta
    c0 = 2.0 * beta

    acc = jnp.zeros((SUBLANE, LANE), jnp.float32)
    for c in range(n_chunks):                      # static, fully-unrolled chunk loop
        r0 = c * chunk_rows
        p = preds_ref[pl.ds(r0, chunk_rows), :].astype(jnp.float32)
        l = labels_ref[pl.ds(r0, chunk_rows), :].astype(jnp.float32)

        poly_neg = ((c2 * l + c1) * l + c0) * (l - 1.0)
        loss = poly_neg * (p ** theta) * jnp.log(1.000001 - p)
        poly_pos = (-alpha) * ((l + 3.0) * l + 2.0) * l
        loss = loss + poly_pos * ((1.0 - p) ** theta) * jnp.log(p + 1e-06)

        if ragged:
            # The last grid block overhangs the array; Pallas fills the OOB
            # part of the input window with unspecified data that may turn
            # into NaN/Inf above.  Discard it with a select (NOT a multiply).
            row_ids = (block_base + r0 +
                       lax.broadcasted_iota(jnp.int32, (chunk_rows, LANE), 0))
            loss = jnp.where(row_ids < valid_rows, loss, 0.0)

        # Tile-aligned VPU-only reduce: (chunk_rows,128) -> (8,128).
        acc = acc + jnp.sum(
            loss.reshape(chunk_rows // SUBLANE, SUBLANE, LANE), axis=0)

    out_ref[...] = acc


def more_focal_loss(preds, labels, alpha=220, beta=20, gamma=100, theta=2,
                    *, max_block_rows=MAX_BLOCK_ROWS):
    """Scalar mean focal loss, matching the PyTorch module's forward()."""
    assert preds.shape == labels.shape
    theta = int(theta)
    # The (<= 8*128-element) zero pad relies on p**theta == 0 killing both
    # branches; theta defaults to 2.
    assert theta >= 1
    n_elem = preds.size

    # Lane-dense 2-D slab [rows, 128] with rows a multiple of 8.  Only the
    # sub-tile tail is zero-padded (contributes exactly 0); no whole-block
    # rounding, and no padding at all when n_elem is already tile-aligned.
    rows = pl.cdiv(pl.cdiv(n_elem, LANE), SUBLANE) * SUBLANE
    pad = rows * LANE - n_elem
    flat_p = preds.reshape(-1)
    flat_l = labels.reshape(-1)
    if pad:
        flat_p = jnp.pad(flat_p, (0, pad))
        flat_l = jnp.pad(flat_l, (0, pad))
    p2d = flat_p.reshape(rows, LANE)
    l2d = flat_l.reshape(rows, LANE)

    max_rows = max(SUBLANE, (int(max_block_rows) // SUBLANE) * SUBLANE)
    block_rows = min(max_rows, rows)
    chunk_rows = CHUNK_ROWS if block_rows % CHUNK_ROWS == 0 else block_rows
    num_blocks = pl.cdiv(rows, block_rows)
    ragged = (rows % block_rows) != 0          # last block overhangs the array

    kernel = functools.partial(
        _focal_loss_kernel,
        alpha=float(alpha), beta=float(beta), gamma=float(gamma), theta=theta,
        block_rows=block_rows, chunk_rows=chunk_rows,
        valid_rows=rows, ragged=ragged)

    partials = pl.pallas_call(
        kernel,
        out_shape=jax.ShapeDtypeStruct((num_blocks * SUBLANE, LANE),
                                       jnp.float32),
        grid_spec=pltpu.PrefetchScalarGridSpec(
            num_scalar_prefetch=0,
            grid=(num_blocks,),
            in_specs=[
                pl.BlockSpec((block_rows, LANE), lambda i: (i, 0)),
                pl.BlockSpec((block_rows, LANE), lambda i: (i, 0)),
            ],
            out_specs=pl.BlockSpec((SUBLANE, LANE), lambda i: (i, 0)),
        ),
        compiler_params=pltpu.CompilerParams(
            # Every block is fully independent -> shard the grid across
            # TensorCores where the chip has more than one (megacore / v7x).
            # (pltpu.CORE_PARALLEL is a possible v7x-specific follow-up.)
            dimension_semantics=("parallel",),
            vmem_limit_bytes=48 * 1024 * 1024),
    )(p2d, l2d)

    return jnp.sum(partials) / jnp.float32(n_elem)


def _reference(preds, labels, alpha=220, beta=20, gamma=100, theta=2):
    # Direct transcription of the PyTorch forward (unfactored).
    p = preds.astype(jnp.float32)
    l = labels.astype(jnp.float32)
    fn2 = gamma * (1 + l) * l * (l - 1) * p ** theta * jnp.log(1.000001 - p)
    fn1 = -beta / 10 * (2 + l) * l * (l - 1) * p ** theta * jnp.log(1.000001 - p)
    f0 = beta * (2 + l) * (l + 1) * (l - 1) * p ** theta * jnp.log(1.000001 - p)
    fp1 = -alpha * (2 + l) * l * (l + 1) * (1 - p) ** theta * jnp.log(p + 1e-06)
    return (fn2 + fn1 + f0 + fp1).mean()


def _make_inputs(key, shape):
    kp, kl = jax.random.split(key)
    preds = jax.random.uniform(kp, shape, jnp.float32, 1e-3, 1.0 - 1e-3)
    # labels in {-1, 0, 1} (negative / ignore / positive style targets)
    labels = jax.random.randint(kl, shape, -1, 2).astype(jnp.float32)
    return preds, labels


if __name__ == "__main__":
    key = jax.random.PRNGKey(0)
    k0, k1, k2 = jax.random.split(key, 3)

    # Main example: NCHW-like heatmap, single block, tile-aligned.
    preds, labels = _make_inputs(k0, (2, 4, 16, 16))
    out = jax.block_until_ready(more_focal_loss(preds, labels))
    ref = _reference(preds, labels)
    assert jnp.allclose(out, ref, rtol=1e-4, atol=1e-4), (out, ref)

    # Odd element count: exercises the sub-tile zero-pad path.
    preds, labels = _make_inputs(k1, (3, 5, 7, 11))
    out = jax.block_until_ready(more_focal_loss(preds, labels))
    ref = _reference(preds, labels)
    assert jnp.allclose(out, ref, rtol=1e-4, atol=1e-4), (out, ref)

    # Multi-block grid + in-kernel chunking + ragged (masked) last block.
    preds, labels = _make_inputs(k2, (129, 1024))
    out = jax.block_until_ready(
        more_focal_loss(preds, labels, max_block_rows=1024))
    ref = _reference(preds, labels)
    assert jnp.allclose(out, ref, rtol=1e-3, atol=1e-3), (out, ref)

    print("KERNEL_OK")
</pallas_src>

<mosaic_0001>
module attributes {stable_mosaic.version = 11 : i64} {
  func.func @_focal_loss_kernel(%arg0: i32, %arg1: memref<16x128xf32, #tpu.memory_space<vmem>>, %arg2: memref<16x128xf32, #tpu.memory_space<vmem>>, %arg3: memref<8x128xf32, #tpu.memory_space<vmem>>) attributes {dimension_semantics = [#tpu.dimension_semantics<parallel>], iteration_bounds = array<i64: 1>, scalar_prefetch = 0 : i64, scratch_operands = 0 : i64, tpu.core_type = #tpu.core_type<tc>, window_params = [{transform_indices = @transform_0, window_bounds = array<i64: 16, 128>}, {transform_indices = @transform_1, window_bounds = array<i64: 16, 128>}, {transform_indices = @transform_2, window_bounds = array<i64: 8, 128>}]} {
    %cst = arith.constant 0.000000e+00 : f32
    %0 = vector.broadcast %cst : f32 to vector<8x128xf32>
    %c0 = arith.constant 0 : index
    %c0_0 = arith.constant 0 : index
    %1 = vector.load %arg1[%c0, %c0_0] : memref<16x128xf32, #tpu.memory_space<vmem>>, vector<16x128xf32>
    %c0_1 = arith.constant 0 : index
    %c0_2 = arith.constant 0 : index
    %2 = vector.load %arg2[%c0_1, %c0_2] : memref<16x128xf32, #tpu.memory_space<vmem>>, vector<16x128xf32>
    %cst_3 = arith.constant 1.180000e+02 : f32
    %3 = vector.broadcast %cst_3 : f32 to vector<16x128xf32>
    %4 = arith.mulf %3, %2 : vector<16x128xf32>
    %cst_4 = arith.constant 1.560000e+02 : f32
    %5 = vector.broadcast %cst_4 : f32 to vector<16x128xf32>
    %6 = arith.addf %4, %5 : vector<16x128xf32>
    %7 = arith.mulf %6, %2 : vector<16x128xf32>
    %cst_5 = arith.constant 4.000000e+01 : f32
    %8 = vector.broadcast %cst_5 : f32 to vector<16x128xf32>
    %9 = arith.addf %7, %8 : vector<16x128xf32>
    %cst_6 = arith.constant 1.000000e+00 : f32
    %10 = vector.broadcast %cst_6 : f32 to vector<16x128xf32>
    %11 = arith.subf %2, %10 : vector<16x128xf32>
    %12 = arith.mulf %9, %11 : vector<16x128xf32>
    %13 = arith.mulf %1, %1 : vector<16x128xf32>
    %14 = arith.mulf %12, %13 : vector<16x128xf32>
    %cst_7 = arith.constant 1.00000095 : f32
    %15 = vector.broadcast %cst_7 : f32 to vector<16x128xf32>
    %16 = arith.subf %15, %1 : vector<16x128xf32>
    %17 = math.log %16 : vector<16x128xf32>
    %18 = arith.mulf %14, %17 : vector<16x128xf32>
    %cst_8 = arith.constant 3.000000e+00 : f32
    %19 = vector.broadcast %cst_8 : f32 to vector<16x128xf32>
    %20 = arith.addf %2, %19 : vector<16x128xf32>
    %21 = arith.mulf %20, %2 : vector<16x128xf32>
    %cst_9 = arith.constant 2.000000e+00 : f32
    %22 = vector.broadcast %cst_9 : f32 to vector<16x128xf32>
    %23 = arith.addf %21, %22 : vector<16x128xf32>
    %cst_10 = arith.constant -2.200000e+02 : f32
    %24 = vector.broadcast %cst_10 : f32 to vector<16x128xf32>
    %25 = arith.mulf %24, %23 : vector<16x128xf32>
    %26 = arith.mulf %25, %2 : vector<16x128xf32>
    %cst_11 = arith.constant 1.000000e+00 : f32
    %27 = vector.broadcast %cst_11 : f32 to vector<16x128xf32>
    %28 = arith.subf %27, %1 : vector<16x128xf32>
    %29 = arith.mulf %28, %28 : vector<16x128xf32>
    %30 = arith.mulf %26, %29 : vector<16x128xf32>
    %cst_12 = arith.constant 9.99999997E-7 : f32
    %31 = vector.broadcast %cst_12 : f32 to vector<16x128xf32>
    %32 = arith.addf %1, %31 : vector<16x128xf32>
    %33 = math.log %32 : vector<16x128xf32>
    %34 = arith.mulf %30, %33 : vector<16x128xf32>
    %35 = arith.addf %18, %34 : vector<16x128xf32>
    %36 = vector.shape_cast %35 : vector<16x128xf32> to vector<2x8x128xf32>
    %cst_13 = arith.constant dense<0.000000e+00> : vector<8x128xf32>
    %37 = vector.multi_reduction <add>, %36, %cst_13 [0] : vector<2x8x128xf32> to vector<8x128xf32>
    %38 = arith.addf %0, %37 : vector<8x128xf32>
    %c0_14 = arith.constant 0 : index
    %c0_15 = arith.constant 0 : index
    %39 = vector.load %arg3[%c0_14, %c0_15] : memref<8x128xf32, #tpu.memory_space<vmem>>, vector<8x128xf32>
    tpu.vector_store %arg3[%c0_14, %c0_15], %38 {strides = array<i32>} : memref<8x128xf32, #tpu.memory_space<vmem>>, vector<8x128xf32>,
    return
  }
  func.func @transform_0(%arg0: i32) -> (i32, i32) {
    %c0_i32 = arith.constant 0 : i32
    %c0_i32_0 = arith.constant 0 : i32
    return %arg0, %c0_i32 : i32, i32
  }
  func.func @transform_1(%arg0: i32) -> (i32, i32) {
    %c0_i32 = arith.constant 0 : i32
    %c0_i32_0 = arith.constant 0 : i32
    return %arg0, %c0_i32 : i32, i32
  }
  func.func @transform_2(%arg0: i32) -> (i32, i32) {
    %c0_i32 = arith.constant 0 : i32
    %c0_i32_0 = arith.constant 0 : i32
    return %arg0, %c0_i32 : i32, i32
  }
}

</mosaic_0001>

<bundles_post_ra>
// kernel: tpu_custom_call.1
= control target key start
LH: loop header
LB: loop body
LE: loop exit
PB: predicated region body
PF: predicated region fallthrough
CT: control target
= control target key end

     0   :  { %7 = vsyncpa [#allocation3], 0  ;;  %s256_s0 = inlined_call_operand.hbm [shape: f32[16,128], index: 0, kind: input, shape index: {}]   ;;  %s257_s1 = inlined_call_operand.hbm [shape: f32[16,128], index: 1, kind: input, shape index: {}]   ;;  %s258_s2 = inlined_call_operand.hbm [shape: f32[8,128], index: 2, kind: output, shape index: {}]  }
   0x1   :  { %8 = vsyncpa [#allocation6], 0 }
   0x2   :  { %9 = vsyncpa [#allocation4], 0  ;;  %s200_s9 = smov [#allocation2]   ;;  %s128_s13 = scalar_lea.hbm %s256_s0, 256 }
   0x3   :  { %s15_s10 = sshll.u32 %s200_s9, 4  ;;  %p129_p0 = scmp.ne.s32.totalorder %s256_s0, %s128_s13  ;;  %s16_s10 = int_to_ptr.vmem [resolvable:$true] %s15_s10 }
   0x4   :  { %p132_p1 = scmp.lt.u32.totalorder %s128_s13, %s256_s0 }
   0x6   :  { %p134_p2 = pnand %p132_p1, %p129_p0 }
   0x8   :  { %137 = shalt.err (!%p134_p2)
}
   0x9   :  { %s138_s18 = scalar_lea.vmem %s16_s10, 256  ;;  %p143_p4 = scmp.lt.s32.totalorder %s16_s10, %s16_s10 }
   0xa   :  { %p139_p3 = scmp.ne.s32.totalorder %s16_s10, %s138_s18  ;;  %p144_p5 = scmp.lt.s32.totalorder %s138_s18, %s138_s18 }
   0xc   :  { %p145_p6 = por %p144_p5, %p143_p4 }
   0xe   :  { %p146_p7 = pnand %p145_p6, %p139_p3 }
  0x10   :  { %149 = shalt.err (!%p146_p7)
}
  0x11   :  { %s201_s19 = smov 128   ;;  %s202_s20 = smov 8  }
  0x12   :  { %21 = dma.hbm_to_vmem [thread:$0]  %s256_s0, 256, %s16_s10, [#allocation3], %s201_s19, %s201_s19, %s202_s20  }
  0x13   :  { %s203_s23 = smov [#allocation5]   ;;  %s150_s27 = scalar_lea.hbm %s257_s1, 256 }
  0x14   :  { %s27_s24 = sshll.u32 %s203_s23, 4  ;;  %p151_p8 = scmp.ne.s32.totalorder %s257_s1, %s150_s27  ;;  %s28_s24 = int_to_ptr.vmem [resolvable:$true] %s27_s24 }
  0x15   :  { %p154_p9 = scmp.lt.u32.totalorder %s150_s27, %s257_s1 }
  0x17   :  { %p156_p10 = pnand %p154_p9, %p151_p8 }
  0x19   :  { %159 = shalt.err (!%p156_p10)
}
  0x1a   :  { %s160_s4 = scalar_lea.vmem %s28_s24, 256  ;;  %p165_p12 = scmp.lt.s32.totalorder %s28_s24, %s28_s24 }
  0x1b   :  { %p161_p11 = scmp.ne.s32.totalorder %s28_s24, %s160_s4  ;;  %p166_p13 = scmp.lt.s32.totalorder %s160_s4, %s160_s4 }
  0x1d   :  { %p167_p0 = por %p166_p13, %p165_p12 }
  0x1f   :  { %p168_p1 = pnand %p167_p0, %p161_p11 }
  0x21   :  { %171 = shalt.err (!%p168_p1)
}
  0x22   :  { %33 = dma.hbm_to_vmem [thread:$0]  %s257_s1, 256, %s28_s24, [#allocation6], %s201_s19, %s201_s19, %s202_s20  }
  0x23   :  { %194 = dma.done.wait [#allocation3], 256  }
  0x24   :  { %195 = vsyncadd [#allocation3], 4294967040 }
  0x25   :  { %196 = dma.done.wait [#allocation6], 256  }
  0x26   :  { %197 = vsyncadd [#allocation6], 4294967040  ;;  %v40_v0 = vld [vmem:[#allocation2] sm:$0xff]  ;;  %v41_v1 = vld [vmem:[#allocation2 + $0x8] sm:$0xff]  ;;  %s204_s1 = smov [#allocation7]  }
  0x27   :  { %v42_v2 = vld [vmem:[#allocation5] sm:$0xff]  ;;  %v43_v3 = vld [vmem:[#allocation5 + $0x8] sm:$0xff]  ;;  %v60_v6 = vsub.f32 1.000001, %v40_v0  ;;  %v61_v7 = vsub.f32 1.000001, %v41_v1  ;;  %v56_v29 = vmul.f32 %v40_v0, %v40_v0  ;;  %v57_v31 = vmul.f32 %v41_v1, %v41_v1 }
  0x28   :  { %v44_v4 = vmul.f32 118.0, %v42_v2  ;;  %v45_v5 = vmul.f32 118.0, %v43_v3  ;;  %v68_v9 = vadd.f32 3.0, %v42_v2  ;;  %v69_v10 = vadd.f32 3.0, %v43_v3  ;;  %s103_s6 = sshll.u32 %s204_s1, 4  ;;  %s104_s6 = int_to_ptr.vmem [resolvable:$true] %s103_s6 }
  0x29   :  { %120 = vlog2.f32 %v60_v6  ;;  %v84_v12 = vadd.f32 1e-06, %v40_v0  ;;  %v113_v17 = vadd.f32 -1.0, %v42_v2  ;;  %v114_v18 = vadd.f32 -1.0, %v43_v3  ;;  %s172_s7 = scalar_lea.vmem %s104_s6, 128  ;;  %p177_p3 = scmp.lt.s32.totalorder %s104_s6, %s104_s6 }
  0x2a   :  { %v46_v8 = vadd.f32 156.0, %v44_v4  ;;  %v47_v11 = vadd.f32 156.0, %v45_v5  ;;  %122 = vlog2.f32 %v61_v7  ;;  %v70_v14 = vmul.f32 %v68_v9, %v42_v2  ;;  %p173_p2 = scmp.ne.s32.totalorder %s104_s6, %s172_s7  ;;  %p178_p4 = scmp.lt.s32.totalorder %s172_s7, %s172_s7 }
  0x2b   :  { %v71_v15 = vmul.f32 %v69_v10, %v43_v3  ;;  %v85_v19 = vadd.f32 1e-06, %v41_v1  ;;  %124 = vlog2.f32 %v84_v12  ;;  %v78_v24 = vsub.f32 1.0, %v40_v0 }
  0x2c   :  { %v48_v13 = vmul.f32 %v46_v8, %v42_v2  ;;  %v49_v16 = vmul.f32 %v47_v11, %v43_v3  ;;  %v72_v21 = vadd.f32 2.0, %v70_v14  ;;  %v79_v27 = vsub.f32 1.0, %v41_v1  ;;  %p179_p5 = por %p178_p4, %p177_p3 }
  0x2d   :  { %v73_v22 = vadd.f32 2.0, %v71_v15  ;;  %126 = vlog2.f32 %v85_v19  ;;  %v80_v33 = vmul.f32 %v78_v24, %v78_v24 }
  0x2e   :  { %v50_v20 = vadd.f32 40.0, %v48_v13  ;;  %v51_v23 = vadd.f32 40.0, %v49_v16  ;;  %v74_v25 = vmul.f32 -220.0, %v72_v21  ;;  %v81_v35 = vmul.f32 %v79_v27, %v79_v27  ;;  %p180_p6 = pnand %p179_p5, %p173_p2 }
  0x2f   :  { %v75_v26 = vmul.f32 -220.0, %v73_v22 }
  0x30   :  { %v54_v28 = vmul.f32 %v113_v17, %v50_v20  ;;  %v55_v30 = vmul.f32 %v114_v18, %v51_v23  ;;  %v76_v32 = vmul.f32 %v74_v25, %v42_v2 }
  0x31   :  { %v77_v34 = vmul.f32 %v75_v26, %v43_v3 }
  0x32   :  { %v58_v37 = vmul.f32 %v56_v29, %v54_v28  ;;  %v59_v39 = vmul.f32 %v57_v31, %v55_v30  ;;  %v82_v42 = vmul.f32 %v80_v33, %v76_v32 }
  0x33   :  { %v121_v36 = vpop.eup %120  ;;  %v83_v44 = vmul.f32 %v81_v35, %v77_v34 }
  0x34   :  { %v123_v38 = vpop.eup %122  ;;  %v63_v40 = vmul.f32 0.6931472, %v121_v36 }
  0x35   :  { %v65_v41 = vmul.f32 0.6931472, %v123_v38  ;;  %v125_v43 = vpop.eup %124 }
  0x36   :  { %v66_v46 = vmul.f32 %v63_v40, %v58_v37  ;;  %v87_v47 = vmul.f32 0.6931472, %v125_v43 }
  0x37   :  { %v127_v45 = vpop.eup %126  ;;  %v67_v48 = vmul.f32 %v65_v41, %v59_v39 }
  0x38   :  { %v89_v49 = vmul.f32 0.6931472, %v127_v45  ;;  %v90_v50 = vmul.f32 %v87_v47, %v82_v42 }
  0x3a   :  { %v91_v51 = vmul.f32 %v89_v49, %v83_v44  ;;  %v92_v52 = vadd.f32 %v90_v50, %v66_v46 }
  0x3c   :  { %v93_v53 = vadd.f32 %v91_v51, %v67_v48 }
  0x3e   :  { %v94_v54 = vadd.f32 %v93_v53, %v92_v52 }
  0x40   :  { %96 = vst [vmem:[#allocation7] sm:$0xff] %v94_v54 }
  0x41   :  { %183 = shalt.err (!%p180_p6)
}
  0x42   :  { %s184_s10 = scalar_lea.hbm %s258_s2, 128 }
  0x43   :  { %p185_p7 = scmp.ne.s32.totalorder %s258_s2, %s184_s10  ;;  %p188_p8 = scmp.lt.u32.totalorder %s184_s10, %s258_s2 }
  0x45   :  { %p190_p9 = pnand %p188_p8, %p185_p7 }
  0x47   :  { %193 = shalt.err (!%p190_p9)
}
  0x48   :  { %106 = dma.vmem_to_hbm [thread:$0]  %s104_s6, 128, %s258_s2, [#allocation4]  }
  0x49   :  { %198 = dma.done.wait [#allocation4], 128  }
  0x4a   :  { %199 = vsyncadd [#allocation4], 4294967168 }
  0x4b   :  { %110 = vsyncpa [#allocation3], 1 }
  0x4c   :  { %111 = vsyncpa [#allocation6], 1 }
  0x4d   :  { %112 = vsyncpa [#allocation4], 1 }

</bundles_post_ra>
